<compile_context>
chip_gen: v7x
topology: tpu7x:2x2x1
jax: 0.10.0
libtpu: 0.0.40
codegen_flags: <defaults>
</compile_context>

<pallas_src>
import jax
import jax.numpy as jnp
from jax.experimental import pallas as pl
from jax.experimental.pallas import tpu as pltpu

EPS = 1e-5  # nn.BatchNorm2d default eps


# --------------------------------------------------------------------------- #
# Kernels
# --------------------------------------------------------------------------- #
def _gx_stats_kernel(g_ref, x_ref, wg_ref, wx_ref, out_ref):
    """Pass 1: partial per-channel sum / sum-of-squares of conv_g and conv_x."""
    cg = jnp.dot(wg_ref[...], g_ref[0], preferred_element_type=jnp.float32)  # (F_int, T)
    cx = jnp.dot(wx_ref[...], x_ref[0], preferred_element_type=jnp.float32)  # (F_int, T)
    f_int = cg.shape[0]
    lane = jax.lax.broadcasted_iota(jnp.int32, (f_int, 128), 1)
    blk = (jnp.where(lane == 0, jnp.sum(cg, axis=1, keepdims=True), 0.0)
           + jnp.where(lane == 1, jnp.sum(cg * cg, axis=1, keepdims=True), 0.0)
           + jnp.where(lane == 2, jnp.sum(cx, axis=1, keepdims=True), 0.0)
           + jnp.where(lane == 3, jnp.sum(cx * cx, axis=1, keepdims=True), 0.0))
    out_ref[0, 0] = blk


def _psi_stats_kernel(g_ref, x_ref, wge_ref, wxe_ref, hb_ref, wp_ref, out_ref):
    """Pass 2: partial sum / sum-of-squares of the psi 1x1 conv output."""
    cg = jnp.dot(wge_ref[...], g_ref[0], preferred_element_type=jnp.float32)
    cx = jnp.dot(wxe_ref[...], x_ref[0], preferred_element_type=jnp.float32)
    s = jnp.maximum(cg + cx + hb_ref[...], 0.0)                               # (F_int, T)
    cp = jnp.dot(wp_ref[...], s, preferred_element_type=jnp.float32)          # (1, T)
    lane = jax.lax.broadcasted_iota(jnp.int32, (1, 128), 1)
    row = (jnp.where(lane == 0, jnp.sum(cp, axis=1, keepdims=True), 0.0)
           + jnp.where(lane == 1, jnp.sum(cp * cp, axis=1, keepdims=True), 0.0))
    out_ref[0, 0] = jnp.concatenate([row, jnp.zeros((7, 128), jnp.float32)], axis=0)


def _output_kernel(g_ref, x_ref, wge_ref, wxe_ref, hb_ref, wpe_ref, hp_ref, out_ref):
    """Pass 3: recompute chain, sigmoid gate, out = x * psi (lane-dense store)."""
    cg = jnp.dot(wge_ref[...], g_ref[0], preferred_element_type=jnp.float32)
    cx = jnp.dot(wxe_ref[...], x_ref[0], preferred_element_type=jnp.float32)
    s = jnp.maximum(cg + cx + hb_ref[...], 0.0)                               # (F_int, T)
    z = jnp.dot(wpe_ref[...], s, preferred_element_type=jnp.float32) + hp_ref[...]  # (1, T)
    psi = 1.0 / (1.0 + jnp.exp(-z))
    out_ref[0] = (x_ref[0].astype(jnp.float32) * psi).astype(out_ref.dtype)


# --------------------------------------------------------------------------- #
# Wrapper
# --------------------------------------------------------------------------- #
def _pick_hw_tile(hw):
    """Largest multiple-of-128 divisor of H*W, capped at 2048 lanes per tile."""
    if hw % 128 != 0:
        # TODO(synk): pad/mask ragged spatial extents; fall back to one full tile.
        return hw
    tile = 128
    while tile * 2 <= min(hw, 2048) and hw % (tile * 2) == 0:
        tile *= 2
    return tile


def _moments(s, ss, count):
    mean = s / count
    var = jnp.maximum(ss / count - mean * mean, 0.0)
    return mean, var


def attention_block_forward(g, x, params):
    """Attention_block.forward for NCHW float32 g:(N,F_g,H,W), x:(N,F_l,H,W)."""
    N, F_g, H, W = g.shape
    Nx, F_l, Hx, Wx = x.shape
    assert (N, H, W) == (Nx, Hx, Wx), "g and x must share batch / spatial dims"

    wg, gamma_g, beta_g = params["w_g"], params["gamma_g"], params["beta_g"]
    wx, gamma_x, beta_x = params["w_x"], params["gamma_x"], params["beta_x"]
    wp, gamma_p, beta_p = params["w_psi"], params["gamma_psi"], params["beta_psi"]
    F_int = wg.shape[0]

    HW = H * W
    TILE = _pick_hw_tile(HW)
    T = HW // TILE
    P = float(N * HW)  # number of positions per channel for the batch statistics

    g3 = g.reshape(N, F_g, HW).astype(jnp.float32)   # free reshape, stays NCHW
    x3 = x.reshape(N, F_l, HW).astype(jnp.float32)

    dsem = pltpu.CompilerParams(dimension_semantics=("parallel", "parallel"))

    g_spec = pl.BlockSpec((1, F_g, TILE), lambda n, t: (n, 0, t))
    x_spec = pl.BlockSpec((1, F_l, TILE), lambda n, t: (n, 0, t))

    def full_spec(rows, cols):  # small weight/param block, resident across the grid
        return pl.BlockSpec((rows, cols), lambda n, t: (0, 0))

    # ---- pass 1: batch statistics of conv_g and conv_x -----------------------
    stats1 = pl.pallas_call(
        _gx_stats_kernel,
        grid=(N, T),
        in_specs=[g_spec, x_spec, full_spec(F_int, F_g), full_spec(F_int, F_l)],
        out_specs=pl.BlockSpec((1, 1, F_int, 128), lambda n, t: (n, t, 0, 0)),
        out_shape=jax.ShapeDtypeStruct((N, T, F_int, 128), jnp.float32),
        compiler_params=dsem,
    )(g3, x3, wg, wx)

    s1 = jnp.sum(stats1, axis=(0, 1))                      # (F_int, 128)
    mean_g, var_g = _moments(s1[:, 0], s1[:, 1], P)
    mean_x, var_x = _moments(s1[:, 2], s1[:, 3], P)

    # Fold BN (train-mode batch stats) into the 1x1 conv weights.  The conv bias
    # shifts the activation and its batch mean identically, so it cancels.
    scale_g = gamma_g * jax.lax.rsqrt(var_g + EPS)
    scale_x = gamma_x * jax.lax.rsqrt(var_x + EPS)
    shift_g = beta_g - mean_g * scale_g
    shift_x = beta_x - mean_x * scale_x

    wg_eff = wg * scale_g[:, None]                         # (F_int, F_g)
    wx_eff = wx * scale_x[:, None]                         # (F_int, F_l)
    hb = (shift_g + shift_x).reshape(F_int, 1)             # combined additive term

    # ---- pass 2: batch statistics of the psi 1x1 conv -------------------------
    stats2 = pl.pallas_call(
        _psi_stats_kernel,
        grid=(N, T),
        in_specs=[g_spec, x_spec, full_spec(F_int, F_g), full_spec(F_int, F_l),
                  full_spec(F_int, 1), full_spec(1, F_int)],
        out_specs=pl.BlockSpec((1, 1, 8, 128), lambda n, t: (n, t, 0, 0)),
        out_shape=jax.ShapeDtypeStruct((N, T, 8, 128), jnp.float32),
        compiler_params=dsem,
    )(g3, x3, wg_eff, wx_eff, hb, wp)

    s2 = jnp.sum(stats2, axis=(0, 1))                      # (8, 128)
    mean_p, var_p = _moments(s2[0, 0], s2[0, 1], P)
    scale_p = gamma_p * jax.lax.rsqrt(var_p + EPS)          # (1,)
    shift_p = beta_p - mean_p * scale_p                     # (1,)
    wp_eff = wp * scale_p[:, None]                          # (1, F_int)
    hp = shift_p.reshape(1, 1)

    # ---- pass 3: sigmoid gate and output --------------------------------------
    out3 = pl.pallas_call(
        _output_kernel,
        grid=(N, T),
        in_specs=[g_spec, x_spec, full_spec(F_int, F_g), full_spec(F_int, F_l),
                  full_spec(F_int, 1), full_spec(1, F_int), full_spec(1, 1)],
        out_specs=pl.BlockSpec((1, F_l, TILE), lambda n, t: (n, 0, t)),
        out_shape=jax.ShapeDtypeStruct((N, F_l, HW), x.dtype),
        compiler_params=dsem,
    )(g3, x3, wg_eff, wx_eff, hb, wp_eff, hp)

    return out3.reshape(N, F_l, H, W)                       # already NCHW


# --------------------------------------------------------------------------- #
# Pure-JAX reference (same math) for a correctness check
# --------------------------------------------------------------------------- #
def _reference_forward(g, x, p):
    def conv1x1(inp, w, b):
        y = jnp.einsum("oc,nchw->nohw", w, inp, precision=jax.lax.Precision.HIGHEST)
        return y + b[None, :, None, None]

    def bn_train(y, gamma, beta):
        mean = jnp.mean(y, axis=(0, 2, 3), keepdims=True)
        var = jnp.mean((y - mean) ** 2, axis=(0, 2, 3), keepdims=True)
        return (gamma[None, :, None, None] * (y - mean) * jax.lax.rsqrt(var + EPS)
                + beta[None, :, None, None])

    g1 = bn_train(conv1x1(g, p["w_g"], p["b_g"]), p["gamma_g"], p["beta_g"])
    x1 = bn_train(conv1x1(x, p["w_x"], p["b_x"]), p["gamma_x"], p["beta_x"])
    s = jnp.maximum(g1 + x1, 0.0)
    ps = bn_train(conv1x1(s, p["w_psi"], p["b_psi"]), p["gamma_psi"], p["beta_psi"])
    psi = 1.0 / (1.0 + jnp.exp(-ps))
    return x * psi


# --------------------------------------------------------------------------- #
if __name__ == "__main__":
    # Attention_block(F_g=8, F_l=4, F_int=32); N=2, 16x16 spatial.
    N, F_g, F_l, F_int, H, W = 2, 8, 4, 32, 16, 16

    key = jax.random.PRNGKey(0)
    ks = jax.random.split(key, 14)

    g = jax.random.normal(ks[0], (N, F_g, H, W), dtype=jnp.float32)
    x = jax.random.normal(ks[1], (N, F_l, H, W), dtype=jnp.float32)

    params = dict(
        # Conv2d weights stored as (C_out, C_in) -- the squeezed (C_out, C_in, 1, 1)
        w_g=0.2 * jax.random.normal(ks[2], (F_int, F_g), dtype=jnp.float32),
        b_g=0.1 * jax.random.normal(ks[3], (F_int,), dtype=jnp.float32),
        gamma_g=1.0 + 0.1 * jax.random.normal(ks[4], (F_int,), dtype=jnp.float32),
        beta_g=0.1 * jax.random.normal(ks[5], (F_int,), dtype=jnp.float32),
        w_x=0.2 * jax.random.normal(ks[6], (F_int, F_l), dtype=jnp.float32),
        b_x=0.1 * jax.random.normal(ks[7], (F_int,), dtype=jnp.float32),
        gamma_x=1.0 + 0.1 * jax.random.normal(ks[8], (F_int,), dtype=jnp.float32),
        beta_x=0.1 * jax.random.normal(ks[9], (F_int,), dtype=jnp.float32),
        w_psi=0.2 * jax.random.normal(ks[10], (1, F_int), dtype=jnp.float32),
        b_psi=0.1 * jax.random.normal(ks[11], (1,), dtype=jnp.float32),
        gamma_psi=1.0 + 0.1 * jax.random.normal(ks[12], (1,), dtype=jnp.float32),
        beta_psi=0.1 * jax.random.normal(ks[13], (1,), dtype=jnp.float32),
    )

    out = attention_block_forward(g, x, params)
    out = jax.block_until_ready(out)

    ref = _reference_forward(g, x, params)
    assert out.shape == (N, F_l, H, W)
    max_err = float(jnp.max(jnp.abs(out - ref)))
    assert jnp.allclose(out, ref, atol=2e-3, rtol=2e-3), f"mismatch vs reference: {max_err}"

    print("KERNEL_OK")
</pallas_src>

<mosaic_0001>
module attributes {stable_mosaic.version = 11 : i64} {
  func.func @_gx_stats_kernel(%arg0: i32, %arg1: i32, %arg2: memref<1x8x256xf32, #tpu.memory_space<vmem>>, %arg3: memref<1x4x256xf32, #tpu.memory_space<vmem>>, %arg4: memref<32x8xf32, #tpu.memory_space<vmem>>, %arg5: memref<32x4xf32, #tpu.memory_space<vmem>>, %arg6: memref<1x1x32x128xf32, #tpu.memory_space<vmem>>) attributes {dimension_semantics = [#tpu.dimension_semantics<parallel>, #tpu.dimension_semantics<parallel>], iteration_bounds = array<i64: 2, 1>, scalar_prefetch = 0 : i64, scratch_operands = 0 : i64, tpu.core_type = #tpu.core_type<tc>, window_params = [{transform_indices = @transform_0, window_bounds = array<i64: 1, 8, 256>}, {transform_indices = @transform_1, window_bounds = array<i64: 1, 4, 256>}, {pipeline_mode = #tpu.pipeline_mode<synchronous>, transform_indices = @transform_2, window_bounds = array<i64: 32, 8>}, {pipeline_mode = #tpu.pipeline_mode<synchronous>, transform_indices = @transform_3, window_bounds = array<i64: 32, 4>}, {transform_indices = @transform_4, window_bounds = array<i64: 1, 1, 32, 128>}]} {
    %c0 = arith.constant 0 : index
    %c0_0 = arith.constant 0 : index
    %0 = vector.load %arg4[%c0, %c0_0] : memref<32x8xf32, #tpu.memory_space<vmem>>, vector<32x8xf32>
    %c0_1 = arith.constant 0 : index
    %c0_2 = arith.constant 0 : index
    %c0_3 = arith.constant 0 : index
    %1 = vector.load %arg2[%c0_1, %c0_2, %c0_3] : memref<1x8x256xf32, #tpu.memory_space<vmem>>, vector<1x8x256xf32>
    %2 = vector.shape_cast %1 : vector<1x8x256xf32> to vector<8x256xf32>
    %cst = arith.constant dense<0.000000e+00> : vector<32x256xf32>
    %3 = tpu.matmul %0, %2, %cst {dimension_numbers = #tpu.dot_dimension_numbers<[1], [0], [0], [1], [0, 0, 1, 1], [], []>} : vector<32x8xf32>, vector<8x256xf32>, vector<32x256xf32> -> vector<32x256xf32>
    %c0_4 = arith.constant 0 : index
    %c0_5 = arith.constant 0 : index
    %4 = vector.load %arg5[%c0_4, %c0_5] : memref<32x4xf32, #tpu.memory_space<vmem>>, vector<32x4xf32>
    %c0_6 = arith.constant 0 : index
    %c0_7 = arith.constant 0 : index
    %c0_8 = arith.constant 0 : index
    %5 = vector.load %arg3[%c0_6, %c0_7, %c0_8] : memref<1x4x256xf32, #tpu.memory_space<vmem>>, vector<1x4x256xf32>
    %6 = vector.shape_cast %5 : vector<1x4x256xf32> to vector<4x256xf32>
    %cst_9 = arith.constant dense<0.000000e+00> : vector<32x256xf32>
    %7 = tpu.matmul %4, %6, %cst_9 {dimension_numbers = #tpu.dot_dimension_numbers<[1], [0], [0], [1], [0, 0, 1, 1], [], []>} : vector<32x4xf32>, vector<4x256xf32>, vector<32x256xf32> -> vector<32x256xf32>
    %8 = tpu.iota {dimensions = array<i32: 1>} : vector<32x128xi32>
    %c0_i32 = arith.constant 0 : i32
    %9 = vector.broadcast %c0_i32 : i32 to vector<32x128xi32>
    %10 = arith.cmpi eq, %8, %9 : vector<32x128xi32>
    %cst_10 = arith.constant dense<0.000000e+00> : vector<32xf32>
    %11 = vector.multi_reduction <add>, %3, %cst_10 [1] : vector<32x256xf32> to vector<32xf32>
    %12 = vector.shape_cast %11 : vector<32xf32> to vector<32x1xf32>
    %cst_11 = arith.constant 0.000000e+00 : f32
    %13 = vector.shape_cast %12 : vector<32x1xf32> to vector<32x1xf32>
    %14 = vector.broadcast %13 : vector<32x1xf32> to vector<32x128xf32>
    %15 = vector.broadcast %cst_11 : f32 to vector<32x128xf32>
    %16 = arith.select %10, %14, %15 : vector<32x128xi1>, vector<32x128xf32>
    %c1_i32 = arith.constant 1 : i32
    %17 = vector.broadcast %c1_i32 : i32 to vector<32x128xi32>
    %18 = arith.cmpi eq, %8, %17 : vector<32x128xi32>
    %19 = arith.mulf %3, %3 : vector<32x256xf32>
    %cst_12 = arith.constant dense<0.000000e+00> : vector<32xf32>
    %20 = vector.multi_reduction <add>, %19, %cst_12 [1] : vector<32x256xf32> to vector<32xf32>
    %21 = vector.shape_cast %20 : vector<32xf32> to vector<32x1xf32>
    %cst_13 = arith.constant 0.000000e+00 : f32
    %22 = vector.shape_cast %21 : vector<32x1xf32> to vector<32x1xf32>
    %23 = vector.broadcast %22 : vector<32x1xf32> to vector<32x128xf32>
    %24 = vector.broadcast %cst_13 : f32 to vector<32x128xf32>
    %25 = arith.select %18, %23, %24 : vector<32x128xi1>, vector<32x128xf32>
    %26 = arith.addf %16, %25 : vector<32x128xf32>
    %c2_i32 = arith.constant 2 : i32
    %27 = vector.broadcast %c2_i32 : i32 to vector<32x128xi32>
    %28 = arith.cmpi eq, %8, %27 : vector<32x128xi32>
    %cst_14 = arith.constant dense<0.000000e+00> : vector<32xf32>
    %29 = vector.multi_reduction <add>, %7, %cst_14 [1] : vector<32x256xf32> to vector<32xf32>
    %30 = vector.shape_cast %29 : vector<32xf32> to vector<32x1xf32>
    %cst_15 = arith.constant 0.000000e+00 : f32
    %31 = vector.shape_cast %30 : vector<32x1xf32> to vector<32x1xf32>
    %32 = vector.broadcast %31 : vector<32x1xf32> to vector<32x128xf32>
    %33 = vector.broadcast %cst_15 : f32 to vector<32x128xf32>
    %34 = arith.select %28, %32, %33 : vector<32x128xi1>, vector<32x128xf32>
    %35 = arith.addf %26, %34 : vector<32x128xf32>
    %c3_i32 = arith.constant 3 : i32
    %36 = vector.broadcast %c3_i32 : i32 to vector<32x128xi32>
    %37 = arith.cmpi eq, %8, %36 : vector<32x128xi32>
    %38 = arith.mulf %7, %7 : vector<32x256xf32>
    %cst_16 = arith.constant dense<0.000000e+00> : vector<32xf32>
    %39 = vector.multi_reduction <add>, %38, %cst_16 [1] : vector<32x256xf32> to vector<32xf32>
    %40 = vector.shape_cast %39 : vector<32xf32> to vector<32x1xf32>
    %cst_17 = arith.constant 0.000000e+00 : f32
    %41 = vector.shape_cast %40 : vector<32x1xf32> to vector<32x1xf32>
    %42 = vector.broadcast %41 : vector<32x1xf32> to vector<32x128xf32>
    %43 = vector.broadcast %cst_17 : f32 to vector<32x128xf32>
    %44 = arith.select %37, %42, %43 : vector<32x128xi1>, vector<32x128xf32>
    %45 = arith.addf %35, %44 : vector<32x128xf32>
    %c0_18 = arith.constant 0 : index
    %c0_19 = arith.constant 0 : index
    %c0_20 = arith.constant 0 : index
    %c0_21 = arith.constant 0 : index
    %46 = vector.load %arg6[%c0_18, %c0_19, %c0_20, %c0_21] : memref<1x1x32x128xf32, #tpu.memory_space<vmem>>, vector<1x1x32x128xf32>
    %47 = vector.shape_cast %46 : vector<1x1x32x128xf32> to vector<32x128xf32>
    %48 = vector.shape_cast %45 : vector<32x128xf32> to vector<1x1x32x128xf32>
    tpu.vector_store %arg6[%c0_18, %c0_19, %c0_20, %c0_21], %48 {strides = array<i32>} : memref<1x1x32x128xf32, #tpu.memory_space<vmem>>, vector<1x1x32x128xf32>,
    return
  }
  func.func @transform_0(%arg0: i32, %arg1: i32) -> (i32, i32, i32) {
    %c0_i32 = arith.constant 0 : i32
    %c0_i32_0 = arith.constant 0 : i32
    return %arg0, %c0_i32, %arg1 : i32, i32, i32
  }
  func.func @transform_1(%arg0: i32, %arg1: i32) -> (i32, i32, i32) {
    %c0_i32 = arith.constant 0 : i32
    %c0_i32_0 = arith.constant 0 : i32
    return %arg0, %c0_i32, %arg1 : i32, i32, i32
  }
  func.func @transform_2(%arg0: i32, %arg1: i32) -> (i32, i32) {
    %c0_i32 = arith.constant 0 : i32
    %c0_i32_0 = arith.constant 0 : i32
    %c0_i32_1 = arith.constant 0 : i32
    return %c0_i32, %c0_i32_0 : i32, i32
  }
  func.func @transform_3(%arg0: i32, %arg1: i32) -> (i32, i32) {
    %c0_i32 = arith.constant 0 : i32
    %c0_i32_0 = arith.constant 0 : i32
    %c0_i32_1 = arith.constant 0 : i32
    return %c0_i32, %c0_i32_0 : i32, i32
  }
  func.func @transform_4(%arg0: i32, %arg1: i32) -> (i32, i32, i32, i32) {
    %c0_i32 = arith.constant 0 : i32
    %c0_i32_0 = arith.constant 0 : i32
    %c0_i32_1 = arith.constant 0 : i32
    return %arg0, %arg1, %c0_i32, %c0_i32_0 : i32, i32, i32, i32
  }
}

</mosaic_0001>

<bundles_post_ra>
// kernel: tpu_custom_call.1
= control target key start
LH: loop header
LB: loop body
LE: loop exit
PB: predicated region body
PF: predicated region fallthrough
CT: control target
= control target key end

     0   :  { %9 = vsyncpa [#allocation3], 0  ;;  %s1072_s0 = inlined_call_operand.vmem [shape: f32[2,8,256], index: 0, kind: input, shape index: {}]   ;;  %s1073_s1 = inlined_call_operand.vmem [shape: f32[2,4,256], index: 1, kind: input, shape index: {}]   ;;  %s1074_s2 = inlined_call_operand.vmem [shape: f32[32,8], index: 2, kind: input, shape index: {}]   ;;  %s1075_s3 = inlined_call_operand.vmem [shape: f32[32,4], index: 3, kind: input, shape index: {}]   ;;  %s1076_s4 = inlined_call_operand.hbm [shape: f32[2,1,32,128], index: 4, kind: output, shape index: {}]  }
   0x1   :  { %11 = vsyncpa [#allocation3 + $0x1], 0  ;;  %s895_s15 = smov 0   ;;  %s897_s16 = smov 0  }
   0x2   :  { %s899_s17 = smov 0   ;;  %s901_s18 = smov 0  }
   0x3   :  { %s903_s19 = smov 0   ;;  %s905_s20 = smov 0  }
   0x4 LB: > { %s699_s21 = sadd.s32 4294967295, %s864_s20   ;;  %s700_s22 = sadd.s32 4294967294, %s864_s20   ;;  %s864_s20 = sphi %s905_s20, %s17_s20   ;;  %s860_s19 = sphi %s903_s19, %s1083_s19   ;;  %s856_s18 = sphi %s901_s18, %s1082_s18   ;;  %s852_s17 = sphi %s899_s17, %s1081_s17   ;;  %s848_s16 = sphi %s897_s16, %s1080_s16   ;;  %s844_s15 = sphi %s895_s15, %s1079_s15  }
   0x5   : > { %s29_s23 = sadd.s32 1, %s860_s19  ;;  %s136_s24 = sadd.s32 1, %s852_s17 }
   0x6   : > { %p31_p0 = scmp.ge.s32.totalorder %s29_s23, 2  ;;  %p146_p1 = scmp.ne.s32.totalorder %s852_s17, %s848_s16 }
   0x7   : > { %p147_p2 = scmp.eq.s32.totalorder %s699_s21, 1  ;;  %p152_p3 = scmp.ne.s32.totalorder %s848_s16, %s844_s15 }
   0x8   : > { %s1085_s23 = smov (%p31_p0, %s29_s23), 0  ;;  %p153_p5 = scmp.eq.s32.totalorder %s700_s22, 1 }
   0x9   : > { %p935_p4 = por %p147_p2, %p146_p1  ;;  %s131_s26 = ssub.s32 %s860_s19, %s1085_s23 }
   0xa   : > { %p703_p6 = scmp.ge.s32.totalorder %s864_s20, 1  ;;  %p134_p7 = scmp.eq.s32.totalorder %s131_s26, 0 }
   0xb   : > { %p942_p8 = por %p153_p5, %p152_p3  ;;  %p203_p9 = scmp.lt.s32.totalorder %s864_s20, 3 }
   0xc   : > { %s948_s28 = scalar_select %p134_p7, %s852_s17, %s136_s24  }
   0xd   : > { %p204_p10 = pnand %p703_p6, %p203_p9 }
   0xe   : > { %p243_p11 = scmp.lt.s32.totalorder (!%p204_p10), %s856_s18, 1  ;;  %v866_v0 = vmov (!%p204_p10), 0.0   ;;  %v262_v1 = vld [vmem:[%s1074_s2] sm:$0xff] (!%p204_p10)  ;;  %vm268_vm0 = vcmask (!%p204_p10), 64512   ;;  %vm390_vm1 = vcmask (!%p204_p10), 1043456   ;;  %vm377_vm2 = vcmask (!%p204_p10), 31744  }
   0xf   : > { %207 = sbr.rel (%p204_p10) target bundleno = 438 (0x1b6), region = 36  ;;  %345 = vmatprep.mubr.f32.mxu0 (!%p204_p10), %v866_v0  ;;  %459 = vmatprep.mubr.f32.mxu1 (!%p204_p10), %v866_v0  ;;  %v370_v6 = vld [vmem:[%s1075_s3] sm:$0xff] (!%p204_p10)  ;;  %v263_v7 = vld [vmem:[%s1074_s2 + $0x8] sm:$0xff] (!%p204_p10)  ;;  %v264_v9 = vld [vmem:[%s1074_s2 + $0x10] sm:$0xff] (!%p204_p10)  ;;  %v484_v62 = vlaneseq (!%p204_p10)  ;;  %s239_s12 = sand.u32 (!%p204_p10), 1, %s848_s16  }
  0x10   : > { %v371_v8 = vld [vmem:[%s1075_s3 + $0x8] sm:$0xff] (!%p204_p10)  ;;  %v372_v10 = vld [vmem:[%s1075_s3 + $0x10] sm:$0xff] (!%p204_p10)  ;;  %v265_v11 = vld [vmem:[%s1074_s2 + $0x18] sm:$0xff] (!%p204_p10)  ;;  %s726_s22 = sshll.u32 (!%p204_p10), %s856_s18, 9 }
  0x11   : > { %v373_v12 = vld [vmem:[%s1075_s3 + $0x18] sm:$0xff] (!%p204_p10) }
  0x16   : > { %s244_s29 = scalar_select %p243_p11, %s856_s18, 1 }
  0x18   : > { %s724_s30 = sshll.u32 %s244_s29, 4  ;;  %s725_s5 = sshll.u32 %s244_s29, 3 }
  0x19   : > { %s250_s8 = scalar_lea.vmem %s1072_s0, %s724_s30  ;;  %s260_s13 = scalar_lea.vmem %s1073_s1, %s725_s5 }
  0x1a   : > { %v267_v2 = vld [vmem:[%s250_s8 + $0x8] sm:$0xff]  ;;  %v266_v3 = vld [vmem:[%s250_s8] sm:$0xff]  ;;  %s1021_s29 = scalar_lea.hbm %s1076_s4, %s726_s22  ;;  %s1026_s30 = scalar_lea.sflag [#allocation3], %s239_s12 }
  0x1b   : > { %v374_v4 = vld [vmem:[%s260_s13] sm:$0xff]  ;;  %281 = vmatprep.subr.mxu0 %v267_v2  ;;  %s704_s13 = sshll.u32 %s239_s12, 5  ;;  %s867_s5 = smov [#allocation2]  }
  0x1c   : > { %v376_v5 = vcombine.high %v374_v4, %v374_v4  ;;  %282 = vmatpush1.msra.mxu0 %v266_v3  ;;  %s1001_s14 = scalar_lea.vmem [#allocation2], %s704_s13  ;;  %s790_s6 = sshll.u32 %s867_s5, 4  ;;  %s791_s6 = int_to_ptr.vmem [resolvable:$false] %s790_s6 }
  0x1d   : > { %709 = vmatmul.mubr.msk.f32.vlgmr.msra.gmra.mrb[0].mxu0 %vm268_vm0, %v262_v1  ;;  %s602_s21 = sshll.u32 %s1001_s14, 4  ;;  %s792_s7 = scalar_lea.vmem %s791_s6, 1024  ;;  %s1015_s21 = int_to_ptr.vmem [resolvable:$true] %s602_s21 }
  0x1e   : > { %713 = vmatprep.subr.msk.mxu1 %vm390_vm1, %v376_v5  ;;  %351 = vmatprep.mubr.f32.mxu0 %v866_v0  ;;  %s786_s18 = scalar_lea.vmem %s1015_s21, 512  ;;  %p793_p1 = scmp.lt.s32.totalorder %s1015_s21, %s791_s6 }
  0x1f   : > { %714 = vmatpush1.msk.msra.mxu1 %vm390_vm1, %v374_v4  ;;  %p787_p12 = scmp.ne.s32.totalorder %s1015_s21, %s786_s18  ;;  %p794_p2 = scmp.lt.s32.totalorder %s792_s7, %s786_s18 }
  0x20   : > { %715 = vmatmul.mubr.msk.f32.vlgmr.msra.gmra.mrb[0].mxu1 %vm377_vm2, %v370_v6 }
  0x21   : > { %465 = vmatprep.mubr.f32.mxu1 %v866_v0  ;;  %710 = vmatmul.mubr.msk.f32.gmra.mrb[2].mxu0 %vm268_vm0, %v263_v7  ;;  %p788_p13 = pnand %p787_p12, %p935_p4  ;;  %p795_p3 = por %p794_p2, %p793_p1 }
  0x22   : > { %357 = vmatprep.mubr.f32.mxu0 %v866_v0 }
  0x23   : > { %p789_p0 = pneg %p788_p13 }
  0x24   : > { %716 = vmatmul.mubr.msk.f32.gmra.mrb[2].mxu1 %vm377_vm2, %v371_v8 }
  0x25   : > { %471 = vmatprep.mubr.f32.mxu1 %v866_v0  ;;  %711 = vmatmul.mubr.msk.f32.gmra.mrb[4].mxu0 %vm268_vm0, %v264_v9  ;;  %p796_p5 = pnand %p795_p3, %p789_p0 }
  0x26   : > { %363 = vmatprep.mubr.f32.mxu0 %v866_v0 }
  0x28   : > { %717 = vmatmul.mubr.msk.f32.gmra.mrb[4].mxu1 %vm377_vm2, %v372_v10 }
  0x29   : > { %477 = vmatprep.mubr.f32.mxu1 %v866_v0  ;;  %712 = vmatmul.mubr.msk.f32.gmra.mrb[6].mxu0 %vm268_vm0, %v265_v11  ;;  %v485_v0 = vand.u32 127, %v484_v62 }
  0x2b   : > { %vm503_vm3 = vcmp.eq.s32.totalorder %v485_v0, 1  ;;  %vm486_vm4 = vcmp.eq.s32.totalorder %v485_v0, 0  ;;  %vm532_vm5 = vcmp.eq.s32.totalorder %v485_v0, 2  ;;  %vm553_vm6 = vcmp.eq.s32.totalorder %v485_v0, 3 }
  0x2c   : > { %718 = vmatmul.mubr.msk.f32.gmra.mrb[6].mxu1 %vm377_vm2, %v373_v12 }
  0xf0   : > { %v347_v13 = vpop.f32.mrb[0].mxu0 }
  0xf1   : > { %v504_v14 = vmul.f32 %v347_v13, %v347_v13  ;;  %v349_v15 = vpop.f32.mrb[1].mxu0 }
  0xf2   : > { %v505_v16 = vmul.f32 %v349_v15, %v349_v15  ;;  %v487_v17 = vadd.f32 %v349_v15, %v347_v13 }
  0xf3   : > { %v461_v18 = vpop.f32.mrb[0].mxu1 }
  0xf4   : > { %v554_v19 = vmul.f32 %v461_v18, %v461_v18  ;;  %v463_v20 = vpop.f32.mrb[1].mxu1  ;;  %488 = vadd.xlane.f32.xlu0 %v487_v17  ;;  %v353_v21 = vpop.f32.mrb[2].mxu0  ;;  %v512_v23 = vadd.f32 %v505_v16, %v504_v14 }
  0xf5   : > { %v555_v22 = vmul.f32 %v463_v20, %v463_v20  ;;  %v533_v24 = vadd.f32 %v463_v20, %v461_v18  ;;  %v506_v25 = vmul.f32 %v353_v21, %v353_v21  ;;  %v355_v26 = vpop.f32.mrb[3].mxu0 }
  0xf6   : > { %v507_v27 = vmul.f32 %v355_v26, %v355_v26  ;;  %v490_v29 = vadd.f32 %v355_v26, %v353_v21 }
  0xf7   : > { %v467_v28 = vpop.f32.mrb[2].mxu1  ;;  %v562_v30 = vadd.f32 %v555_v22, %v554_v19 }
  0xf8   : > { %v556_v31 = vmul.f32 %v467_v28, %v467_v28  ;;  %v469_v32 = vpop.f32.mrb[3].mxu1  ;;  %513 = vadd.xlane.f32.xlu0 %v512_v23  ;;  %v515_v34 = vadd.f32 %v507_v27, %v506_v25  ;;  %v359_v35 = vpop.f32.mrb[4].mxu0 }
  0xf9   : > { %v557_v33 = vmul.f32 %v469_v32, %v469_v32  ;;  %v536_v36 = vadd.f32 %v469_v32, %v467_v28  ;;  %v508_v37 = vmul.f32 %v359_v35, %v359_v35  ;;  %v361_v38 = vpop.f32.mrb[5].mxu0 }
  0xfa   : > { %516 = vadd.xlane.f32.xlu1 %v515_v34  ;;  %v509_v39 = vmul.f32 %v361_v38, %v361_v38  ;;  %v493_v40 = vadd.f32 %v361_v38, %v359_v35 }
  0xfb   : > { %v565_v41 = vadd.f32 %v557_v33, %v556_v31  ;;  %v473_v42 = vpop.f32.mrb[4].mxu1 }
  0xfc   : > { %v558_v43 = vmul.f32 %v473_v42, %v473_v42  ;;  %v475_v44 = vpop.f32.mrb[5].mxu1  ;;  %534 = vadd.xlane.f32.xlu0 %v533_v24  ;;  %v365_v45 = vpop.f32.mrb[6].mxu0  ;;  %v518_v46 = vadd.f32 %v509_v39, %v508_v37 }
  0xfd   : > { %v559_v47 = vmul.f32 %v475_v44, %v475_v44  ;;  %v539_v48 = vadd.f32 %v475_v44, %v473_v42  ;;  %v510_v49 = vmul.f32 %v365_v45, %v365_v45  ;;  %v367_v50 = vpop.f32.mrb[7].mxu0 }
  0xfe   : > { %537 = vadd.xlane.f32.xlu1 %v536_v36  ;;  %v496_v51 = vadd.f32 %v367_v50, %v365_v45  ;;  %v511_v52 = vmul.f32 %v367_v50, %v367_v50 }
  0xff   : > { %v479_v53 = vpop.f32.mrb[6].mxu1  ;;  %v568_v54 = vadd.f32 %v559_v47, %v558_v43 }
 0x100   : > { %v560_v55 = vmul.f32 %v479_v53, %v479_v53  ;;  %v481_v56 = vpop.f32.mrb[7].mxu1  ;;  %491 = vadd.xlane.f32.xlu0 %v490_v29  ;;  %v521_v59 = vadd.f32 %v511_v52, %v510_v49 }
 0x101   : > { %v542_v57 = vadd.f32 %v481_v56, %v479_v53  ;;  %v561_v58 = vmul.f32 %v481_v56, %v481_v56 }
 0x102   : > { %494 = vadd.xlane.f32.xlu1 %v493_v40 }
 0x103   : > { %v571_v60 = vadd.f32 %v561_v58, %v560_v55 }
 0x104   : > { %563 = vadd.xlane.f32.xlu0 %v562_v30 }
 0x106   : > { %566 = vadd.xlane.f32.xlu1 %v565_v41 }
 0x108   : > { %519 = vadd.xlane.f32.xlu0 %v518_v46 }
 0x10a   : > { %497 = vadd.xlane.f32.xlu1 %v496_v51 }
 0x10c   : > { %540 = vadd.xlane.f32.xlu0 %v539_v48 }
 0x10e   : > { %522 = vadd.xlane.f32.xlu1 %v521_v59 }
 0x110   : > { %569 = vadd.xlane.f32.xlu0 %v568_v54 }
 0x112   : > { %543 = vadd.xlane.f32.xlu1 %v542_v57 }
 0x116   : > { %572 = vadd.xlane.f32.xlu1 %v571_v60 }
 0x181   : > { %v489_v61 = vpop.xlane.xlu0 %488 }
 0x182   : > { %v499_v6 = vsel %vm486_vm4, %v489_v61, 0.0 }
 0x185   : > { %v514_v63 = vpop.xlane.xlu0 %513 }
 0x186   : > { %v524_v4 = vsel %vm503_vm3, %v514_v63, 0.0 }
 0x187   : > { %v517_v1 = vpop.xlane.xlu1 %516  ;;  %v528_v10 = vadd.f32 %v524_v4, %v499_v6 }
 0x188   : > { %v525_v7 = vsel %vm503_vm3, %v517_v1, 0.0 }
 0x189   : > { %v535_v2 = vpop.xlane.xlu0 %534 }
 0x18a   : > { %v545_v8 = vsel %vm532_vm5, %v535_v2, 0.0 }
 0x18b   : > { %v538_v3 = vpop.xlane.xlu1 %537  ;;  %v549_v13 = vadd.f32 %v545_v8, %v528_v10 }
 0x18c   : > { %v546_v15 = vsel %vm532_vm5, %v538_v3, 0.0 }
 0x18d   : > { %v492_v5 = vpop.xlane.xlu0 %491 }
 0x18e   : > { %v500_v9 = vsel %vm486_vm4, %v492_v5, 0.0 }
 0x18f   : > { %v529_v11 = vadd.f32 %v525_v7, %v500_v9  ;;  %v495_v12 = vpop.xlane.xlu1 %494 }
 0x190   : > { %v501_v26 = vsel %vm486_vm4, %v495_v12, 0.0 }
 0x191   : > { %v564_v14 = vpop.xlane.xlu0 %563  ;;  %v550_v18 = vadd.f32 %v546_v15, %v529_v11 }
 0x192   : > { %v574_v16 = vsel %vm553_vm6, %v564_v14, 0.0 }
 0x193   : > { %v578_v17 = vadd.f32 %v574_v16, %v549_v13  ;;  %v567_v19 = vpop.xlane.xlu1 %566 }
 0x194   : > { %v575_v20 = vsel %vm553_vm6, %v567_v19, 0.0 }
 0x195   : > { %582 = vst [vmem:[%s1001_s14] sm:$0xff] %v578_v17  ;;  %v579_v21 = vadd.f32 %v575_v20, %v550_v18  ;;  %v520_v22 = vpop.xlane.xlu0 %519 }
 0x196   : > { %v526_v24 = vsel %vm503_vm3, %v520_v22, 0.0 }
 0x197   : > { %583 = vst [vmem:[%s1001_s14 + $0x8] sm:$0xff] %v579_v21  ;;  %v498_v23 = vpop.xlane.xlu1 %497  ;;  %v530_v28 = vadd.f32 %v526_v24, %v501_v26 }
 0x198   : > { %v502_v36 = vsel %vm486_vm4, %v498_v23, 0.0 }
 0x199   : > { %v541_v25 = vpop.xlane.xlu0 %540 }
 0x19a   : > { %v547_v27 = vsel %vm532_vm5, %v541_v25, 0.0 }
 0x19b   : > { %v523_v29 = vpop.xlane.xlu1 %522  ;;  %v551_v30 = vadd.f32 %v547_v27, %v530_v28 }
 0x19c   : > { %v527_v32 = vsel %vm503_vm3, %v523_v29, 0.0 }
 0x19d   : > { %v570_v31 = vpop.xlane.xlu0 %569  ;;  %v531_v38 = vadd.f32 %v527_v32, %v502_v36 }
 0x19e   : > { %v576_v33 = vsel %vm553_vm6, %v570_v31, 0.0 }
 0x19f   : > { %v580_v34 = vadd.f32 %v576_v33, %v551_v30  ;;  %v544_v35 = vpop.xlane.xlu1 %543 }
 0x1a0   : > { %v548_v37 = vsel %vm532_vm5, %v544_v35, 0.0 }
 0x1a1   : > { %584 = vst [vmem:[%s1001_s14 + $0x10] sm:$0xff] %v580_v34  ;;  %v552_v39 = vadd.f32 %v548_v37, %v531_v38 }
 0x1a3   : > { %v573_v40 = vpop.xlane.xlu1 %572 }
 0x1a4   : > { %v577_v41 = vsel %vm553_vm6, %v573_v40, 0.0 }
 0x1a5   : > { %v581_v42 = vadd.f32 %v577_v41, %v552_v39 }
 0x1a7   : > { %585 = vst [vmem:[%s1001_s14 + $0x18] sm:$0xff] %v581_v42 }
 0x1a8   : > { %799 = shalt.err (!%p796_p5)
}
 0x1a9   : > { %s800_s8 = scalar_lea.hbm %s1021_s29, 512  ;;  %s804_s11 = scalar_lea.hbm %s1076_s4, 1024 }
 0x1aa   : > { %p801_p6 = scmp.ne.s32.totalorder %s1021_s29, %s800_s8  ;;  %p805_p10 = scmp.lt.u32.totalorder %s1021_s29, %s1076_s4 }
 0x1ab   : > { %p806_p11 = scmp.lt.u32.totalorder %s804_s11, %s800_s8  ;;  %p808_p13 = scmp.lt.u32.totalorder %s800_s8, %s1021_s29 }
 0x1ac   : > { %p802_p7 = pnand %p801_p6, %p935_p4 }
 0x1ad   : > { %p807_p12 = por %p806_p11, %p805_p10 }
 0x1ae   : > { %p803_p9 = pneg %p802_p7 }
 0x1af   : > { %p809_p0 = por %p808_p13, %p807_p12 }
 0x1b1   : > { %p810_p1 = pnand %p809_p0, %p803_p9 }
 0x1b3   : > { %813 = shalt.err (!%p810_p1)
}
 0x1b4   : > { %s868_s14 = smov 128   ;;  %s869_s22 = smov 8  }
 0x1b5   : > { %727 = dma.vmem_to_hbm [thread:$0]  (%p935_p4), %s1015_s21, 512, %s1021_s29, %s1026_s30, %s868_s14, %s868_s14, %s869_s22  }
 0x1b6 PF: > { %p733_p2 = scmp.ge.s32.totalorder %s864_s20, 2  ;;  %s617_s24 = sand.u32 1, %s844_s15  }
 0x1b7   : > { %s618_s26 = scalar_lea.sflag [#allocation3], %s617_s24 }
 0x1b8   : > { %p730_p3 = pnand %p733_p2, %p942_p8 }
 0x1ba   : > { %839 = dma.done.wait (!%p730_p3), %s618_s26, 512  }
 0x1bb   : > { %841 = vsyncadd (!%p730_p3), %s618_s26, 4294966784  ;;  %s17_s20 = sadd.s32 1, %s864_s20   ;;  %s1079_s15 = smov %s848_s16 }
 0x1bc   : > { %p14_p5 = scmp.ge.s32.totalorder %s17_s20, 4   ;;  %s1080_s16 = smov %s852_s17 }
 0x1bd   : > { %s1081_s17 = smov %s948_s28  ;;  %s1082_s18 = smov %s860_s19 }
 0x1be   : > { %s1083_s19 = smov %s1085_s23  ;;  %16 = sbr.rel (!%p14_p5) target bundleno = 4 (0x4), region = 74 }
 0x1c5   :  { %623 = vsyncpa [#allocation3], 1 }
 0x1c6   :  { %625 = vsyncpa [#allocation3 + $0x1], 1 }

</bundles_post_ra>
